<compile_context>
chip_gen: v6e
topology: v6e:2x2x1
jax: 0.10.0
libtpu: 0.0.40
codegen_flags: <defaults>
</compile_context>

<pallas_src>
import numpy as np
import jax
import jax.numpy as jnp
from jax.experimental import pallas as pl
from jax.experimental.pallas import tpu as pltpu


# =====================================================================
# Host-side setup: PennyLane gate math in complex128 (parameter preprocessing)
# =====================================================================
def _rot(phi, theta, omega):
    # qml.Rot(phi, theta, omega) = RZ(omega) RY(theta) RZ(phi)
    c, s = np.cos(theta / 2.0), np.sin(theta / 2.0)
    return np.array(
        [[np.exp(-0.5j * (phi + omega)) * c, -np.exp(0.5j * (phi - omega)) * s],
         [np.exp(-0.5j * (phi - omega)) * s,  np.exp(0.5j * (phi + omega)) * c]],
        dtype=np.complex128)


def _apply_1q(states, gate, wire, n_wires):
    # states: (n, 2**n_wires); PennyLane convention: wire 0 = MSB of the basis index.
    n, d = states.shape
    t = states.reshape((n,) + (2,) * n_wires)
    t = np.tensordot(t, gate, axes=([1 + wire], [1]))
    t = np.moveaxis(t, -1, 1 + wire)
    return t.reshape(n, d)


def _apply_cz(states, w1, w2, n_wires):
    d = states.shape[1]
    idx = np.arange(d)
    b1 = (idx >> (n_wires - 1 - w1)) & 1
    b2 = (idx >> (n_wires - 1 - w2)) & 1
    sign = np.where((b1 & b2) == 1, -1.0, 1.0)
    return states * sign[None, :]


def _apply_sel(states, weights, n_wires):
    """StronglyEntanglingLayers(weights, imprimitive=CZ); weights: (qdepth, n_wires, 3)."""
    for l in range(weights.shape[0]):
        for j in range(n_wires):
            states = _apply_1q(states, _rot(*weights[l, j]), j, n_wires)
        if n_wires > 1:
            r = (l % (n_wires - 1)) + 1          # PennyLane default ranges
            for j in range(n_wires):
                states = _apply_cz(states, j, (j + r) % n_wires, n_wires)
    return states


def sel_column0(weights, n_wires):
    """U_SEL |0...0>  (the only column the kernel needs; exact one-hot identity)."""
    d = 2 ** n_wires
    e0 = np.zeros((1, d), np.complex128)
    e0[0, 0] = 1.0
    return _apply_sel(e0, weights, n_wires)[0]


def pauliz_signs_T(n_wires):
    """ST[k, i] = +1 if bit i of basis state k is 0 else -1  (wire 0 = MSB)."""
    d = 2 ** n_wires
    idx = np.arange(d)
    st = np.empty((d, n_wires), np.float64)
    for i in range(n_wires):
        bit = (idx >> (n_wires - 1 - i)) & 1
        st[:, i] = np.where(bit == 0, 1.0, -1.0)
    return st


# =====================================================================
# Pallas kernel: (phase matvec) + circuit column broadcast + fused readout matmul.
# =====================================================================
def qnn_kernel(x_ref, wds_ref, u0_ref, mup_ref, bu_ref, out_ref):
    # Global RZ phase of the encoded state:
    #   ph = -0.5 * (x @ (Wd^T @ 1) + 1^T b_d)   (the b_d part is folded into u0 on host)
    # Done as elementwise multiply + row reduce: no narrow MXU matmul, no (BT,8) tile.
    ph = -0.5 * jnp.sum(x_ref[...] * wds_ref[...], axis=-1, keepdims=True)   # (BT, 1)
    cp = jnp.cos(ph)
    sp = jnp.sin(ph)

    # State after SEL: e^{i*ph} * U_SEL|0...0>  (one-hot initial state => column broadcast).
    u0 = u0_ref[...]                                                          # (2, D)
    u0r = u0[0:1, :]
    u0i = u0[1:2, :]
    sr = cp * u0r - sp * u0i                                                  # (BT, D)
    si = cp * u0i + sp * u0r
    probs = sr * sr + si * si                                                 # |amp|^2

    # Fused PauliZ readout + linear_up:  out = probs @ (ST @ Wu^T) + b_u
    # Single MXU-shaped (BT,256)@(256,256) matmul; lane-dense 256-wide store.
    out_ref[...] = jnp.dot(probs, mup_ref[...],
                           preferred_element_type=jnp.float32) + bu_ref[...]


def qnn_forward(x_nchw, wd_sum, u0_pack, M_up, bu):
    b, c, w, h = x_nchw.shape
    in_dim = c * w * h
    d = u0_pack.shape[1]
    x_flat = x_nchw.reshape(b, in_dim).astype(jnp.float32)   # 'b c w h -> b (c w h)'

    # Batch tiling: at least 2 parallel grid steps (v7x has 2 TensorCores), tile rows
    # sublane-aligned (multiple of 8), capped at 512 rows (HBM-efficient, tiny vs VMEM).
    half = (b + 1) // 2
    bt = min(512, max(8, ((half + 7) // 8) * 8))
    nb = max(2, -(-b // bt))
    bp = nb * bt
    xp = jnp.pad(x_flat, ((0, bp - b), (0, 0))) if bp != b else x_flat

    cost = pl.CostEstimate(
        flops=2 * bp * d * in_dim + 8 * bp * d + 2 * bp * in_dim,
        transcendentals=2 * bp,
        bytes_accessed=4 * (2 * bp * in_dim + d * in_dim + 2 * d + 2 * in_dim),
    )

    out_flat = pl.pallas_call(
        qnn_kernel,
        out_shape=jax.ShapeDtypeStruct((bp, in_dim), jnp.float32),
        grid=(nb,),
        in_specs=[
            pl.BlockSpec((bt, in_dim), lambda i: (i, 0)),   # x tile
            pl.BlockSpec((1, in_dim),  lambda i: (0, 0)),   # wd_sum = Wd^T @ 1
            pl.BlockSpec((2, d),       lambda i: (0, 0)),   # [Re; Im] of e^{-i*bd_sum/2} U|0..0>
            pl.BlockSpec((d, in_dim),  lambda i: (0, 0)),   # M_up = ST @ Wu^T
            pl.BlockSpec((1, in_dim),  lambda i: (0, 0)),   # b_up
        ],
        out_specs=pl.BlockSpec((bt, in_dim), lambda i: (i, 0)),
        compiler_params=pltpu.CompilerParams(
            dimension_semantics=("parallel",)),
        cost_estimate=cost,
    )(xp, wd_sum, u0_pack, M_up, bu)

    return out_flat[:b].reshape(b, c, w, h)


# =====================================================================
# Pure-numpy reference (complex128, full per-gate circuit) for correctness.
# =====================================================================
def reference(x_nchw, WdT, bd, WuT, bu, weights, n_wires):
    x = np.asarray(x_nchw, np.float64)
    b, c, w, h = x.shape
    d = 2 ** n_wires
    idx = np.arange(d)
    WdT64 = np.asarray(WdT, np.float64)
    bd64 = np.asarray(bd, np.float64).reshape(-1)
    WuT64 = np.asarray(WuT, np.float64)
    bu64 = np.asarray(bu, np.float64).reshape(-1)

    xr = x.reshape(b, -1) @ WdT64 + bd64                     # linear_down, (b, n_wires)
    z = np.zeros((b, n_wires), np.float64)
    for bi in range(b):
        state = np.zeros((1, d), np.complex128)
        state[0, 0] = 1.0
        for j in range(n_wires):                             # RZ(inputs[j]) on wire j
            bit = (idx >> (n_wires - 1 - j)) & 1
            state = state * np.exp(1j * xr[bi, j] * (bit - 0.5))[None, :]
        state = _apply_sel(state, weights, n_wires)          # SEL with CZ ring
        probs = np.abs(state[0]) ** 2
        for i in range(n_wires):                             # expval(PauliZ(i))
            bit = (idx >> (n_wires - 1 - i)) & 1
            z[bi, i] = np.sum(probs * np.where(bit == 0, 1.0, -1.0))
    out = z @ WuT64 + bu64                                   # linear_up
    return out.reshape(b, c, w, h)


if __name__ == "__main__":
    # Small shapes consistent with the module: input_dim = C*W*H, wires = hidden_features.
    B, C, W, H = 2, 1, 16, 16
    IN_DIM = C * W * H            # 256
    H_FEAT = 8                    # hidden_features (= number of qubits)
    QDEPTH = 2                    # qdepth
    D = 2 ** H_FEAT               # 256 amplitudes
    # TODO(synk): add_noise in {1,2,3} (PhaseDamping / AmplitudeDamping / Depolarizing)
    #             requires density-matrix channel simulation; only add_noise=0 implemented.

    key = jax.random.PRNGKey(0)
    kx, kwd, kbd, kwu, kbu, kw = jax.random.split(key, 6)

    x = jax.random.normal(kx, (B, C, W, H), dtype=jnp.float32)

    # Deterministic parameter init (nn.Linear-style scaling; qnode weights ~ N(0,1)*0.4).
    WdT = jax.random.normal(kwd, (IN_DIM, H_FEAT), jnp.float32) / np.sqrt(IN_DIM)
    bd = jax.random.normal(kbd, (1, H_FEAT), jnp.float32) / np.sqrt(IN_DIM)
    WuT = jax.random.normal(kwu, (H_FEAT, IN_DIM), jnp.float32) / np.sqrt(H_FEAT)
    bu = jax.random.normal(kbu, (1, IN_DIM), jnp.float32) / np.sqrt(H_FEAT)
    weights = 0.4 * jax.random.normal(kw, (QDEPTH, H_FEAT, 3), jnp.float32)

    # Host precompute of the fused constants (complex128 / float64 -> f32).
    weights64 = np.asarray(weights, np.float64)
    bd_sum = float(np.sum(np.asarray(bd, np.float64)))
    u0 = sel_column0(weights64, H_FEAT) * np.exp(-0.5j * bd_sum)      # bias phase folded in
    u0_pack = jnp.asarray(
        np.stack([np.real(u0), np.imag(u0)]).astype(np.float32))      # (2, D)
    wd_sum = jnp.asarray(
        np.asarray(WdT, np.float64).sum(axis=1)[None, :].astype(np.float32))  # (1, IN_DIM)
    M_up = jnp.asarray(
        (pauliz_signs_T(H_FEAT) @ np.asarray(WuT, np.float64)).astype(np.float32))  # (D, IN_DIM)

    out = qnn_forward(x, wd_sum, u0_pack, M_up, bu)
    out = jax.block_until_ready(out)

    ref = reference(np.asarray(x), np.asarray(WdT), np.asarray(bd),
                    np.asarray(WuT), np.asarray(bu), weights64, H_FEAT)
    np.testing.assert_allclose(np.asarray(out), ref, atol=1e-3, rtol=0)

    print("KERNEL_OK")
</pallas_src>

<mosaic_0001>
module attributes {stable_mosaic.version = 11 : i64} {
  func.func @qnn_kernel(%arg0: i32, %arg1: memref<8x256xf32, #tpu.memory_space<vmem>>, %arg2: memref<1x256xf32, #tpu.memory_space<vmem>>, %arg3: memref<2x256xf32, #tpu.memory_space<vmem>>, %arg4: memref<256x256xf32, #tpu.memory_space<vmem>>, %arg5: memref<1x256xf32, #tpu.memory_space<vmem>>, %arg6: memref<8x256xf32, #tpu.memory_space<vmem>>) attributes {dimension_semantics = [#tpu.dimension_semantics<parallel>], iteration_bounds = array<i64: 2>, scalar_prefetch = 0 : i64, scratch_operands = 0 : i64, tpu.core_type = #tpu.core_type<tc>, window_params = [{transform_indices = @transform_0, window_bounds = array<i64: 8, 256>}, {pipeline_mode = #tpu.pipeline_mode<synchronous>, transform_indices = @transform_1, window_bounds = array<i64: 1, 256>}, {pipeline_mode = #tpu.pipeline_mode<synchronous>, transform_indices = @transform_2, window_bounds = array<i64: 2, 256>}, {pipeline_mode = #tpu.pipeline_mode<synchronous>, transform_indices = @transform_3, window_bounds = array<i64: 256, 256>}, {pipeline_mode = #tpu.pipeline_mode<synchronous>, transform_indices = @transform_4, window_bounds = array<i64: 1, 256>}, {transform_indices = @transform_5, window_bounds = array<i64: 8, 256>}]} {
    %c0 = arith.constant 0 : index
    %c0_0 = arith.constant 0 : index
    %0 = vector.load %arg1[%c0, %c0_0] : memref<8x256xf32, #tpu.memory_space<vmem>>, vector<8x256xf32>
    %c0_1 = arith.constant 0 : index
    %c0_2 = arith.constant 0 : index
    %1 = vector.load %arg2[%c0_1, %c0_2] : memref<1x256xf32, #tpu.memory_space<vmem>>, vector<1x256xf32>
    %2 = vector.broadcast %1 : vector<1x256xf32> to vector<8x256xf32>
    %3 = arith.mulf %0, %2 : vector<8x256xf32>
    %cst = arith.constant dense<0.000000e+00> : vector<8xf32>
    %4 = vector.multi_reduction <add>, %3, %cst [1] : vector<8x256xf32> to vector<8xf32>
    %5 = vector.shape_cast %4 : vector<8xf32> to vector<8x1xf32>
    %cst_3 = arith.constant -5.000000e-01 : f32
    %6 = vector.broadcast %cst_3 : f32 to vector<8x1xf32>
    %7 = arith.mulf %6, %5 : vector<8x1xf32>
    %8 = math.cos %7 : vector<8x1xf32>
    %9 = math.sin %7 : vector<8x1xf32>
    %c0_4 = arith.constant 0 : index
    %c0_5 = arith.constant 0 : index
    %10 = vector.load %arg3[%c0_4, %c0_5] : memref<2x256xf32, #tpu.memory_space<vmem>>, vector<2x256xf32>
    %11 = vector.extract_strided_slice %10 {offsets = [0, 0], sizes = [1, 256], strides = [1, 1]} : vector<2x256xf32> to vector<1x256xf32>
    %12 = vector.extract_strided_slice %10 {offsets = [1, 0], sizes = [1, 256], strides = [1, 1]} : vector<2x256xf32> to vector<1x256xf32>
    %13 = vector.broadcast %8 : vector<8x1xf32> to vector<8x256xf32>
    %14 = vector.broadcast %11 : vector<1x256xf32> to vector<8x256xf32>
    %15 = arith.mulf %13, %14 : vector<8x256xf32>
    %16 = vector.broadcast %9 : vector<8x1xf32> to vector<8x256xf32>
    %17 = vector.broadcast %12 : vector<1x256xf32> to vector<8x256xf32>
    %18 = arith.mulf %16, %17 : vector<8x256xf32>
    %19 = arith.subf %15, %18 : vector<8x256xf32>
    %20 = vector.broadcast %8 : vector<8x1xf32> to vector<8x256xf32>
    %21 = vector.broadcast %12 : vector<1x256xf32> to vector<8x256xf32>
    %22 = arith.mulf %20, %21 : vector<8x256xf32>
    %23 = vector.broadcast %9 : vector<8x1xf32> to vector<8x256xf32>
    %24 = vector.broadcast %11 : vector<1x256xf32> to vector<8x256xf32>
    %25 = arith.mulf %23, %24 : vector<8x256xf32>
    %26 = arith.addf %22, %25 : vector<8x256xf32>
    %27 = arith.mulf %19, %19 : vector<8x256xf32>
    %28 = arith.mulf %26, %26 : vector<8x256xf32>
    %29 = arith.addf %27, %28 : vector<8x256xf32>
    %c0_6 = arith.constant 0 : index
    %c0_7 = arith.constant 0 : index
    %30 = vector.load %arg4[%c0_6, %c0_7] : memref<256x256xf32, #tpu.memory_space<vmem>>, vector<256x256xf32>
    %cst_8 = arith.constant dense<0.000000e+00> : vector<8x256xf32>
    %31 = tpu.matmul %29, %30, %cst_8 {dimension_numbers = #tpu.dot_dimension_numbers<[1], [0], [0], [1], [0, 0, 1, 1], [], []>} : vector<8x256xf32>, vector<256x256xf32>, vector<8x256xf32> -> vector<8x256xf32>
    %c0_9 = arith.constant 0 : index
    %c0_10 = arith.constant 0 : index
    %32 = vector.load %arg5[%c0_9, %c0_10] : memref<1x256xf32, #tpu.memory_space<vmem>>, vector<1x256xf32>
    %33 = vector.broadcast %32 : vector<1x256xf32> to vector<8x256xf32>
    %34 = arith.addf %31, %33 : vector<8x256xf32>
    %c0_11 = arith.constant 0 : index
    %c0_12 = arith.constant 0 : index
    %35 = vector.load %arg6[%c0_11, %c0_12] : memref<8x256xf32, #tpu.memory_space<vmem>>, vector<8x256xf32>
    tpu.vector_store %arg6[%c0_11, %c0_12], %34 {strides = array<i32>} : memref<8x256xf32, #tpu.memory_space<vmem>>, vector<8x256xf32>,
    return
  }
  func.func @transform_0(%arg0: i32) -> (i32, i32) {
    %c0_i32 = arith.constant 0 : i32
    %c0_i32_0 = arith.constant 0 : i32
    return %arg0, %c0_i32 : i32, i32
  }
  func.func @transform_1(%arg0: i32) -> (i32, i32) {
    %c0_i32 = arith.constant 0 : i32
    %c0_i32_0 = arith.constant 0 : i32
    %c0_i32_1 = arith.constant 0 : i32
    return %c0_i32, %c0_i32_0 : i32, i32
  }
  func.func @transform_2(%arg0: i32) -> (i32, i32) {
    %c0_i32 = arith.constant 0 : i32
    %c0_i32_0 = arith.constant 0 : i32
    %c0_i32_1 = arith.constant 0 : i32
    return %c0_i32, %c0_i32_0 : i32, i32
  }
  func.func @transform_3(%arg0: i32) -> (i32, i32) {
    %c0_i32 = arith.constant 0 : i32
    %c0_i32_0 = arith.constant 0 : i32
    %c0_i32_1 = arith.constant 0 : i32
    return %c0_i32, %c0_i32_0 : i32, i32
  }
  func.func @transform_4(%arg0: i32) -> (i32, i32) {
    %c0_i32 = arith.constant 0 : i32
    %c0_i32_0 = arith.constant 0 : i32
    %c0_i32_1 = arith.constant 0 : i32
    return %c0_i32, %c0_i32_0 : i32, i32
  }
  func.func @transform_5(%arg0: i32) -> (i32, i32) {
    %c0_i32 = arith.constant 0 : i32
    %c0_i32_0 = arith.constant 0 : i32
    return %arg0, %c0_i32 : i32, i32
  }
}

</mosaic_0001>

<bundles_post_ra>
// kernel: tpu_custom_call.1
= control target key start
LH: loop header
LB: loop body
LE: loop exit
PB: predicated region body
PF: predicated region fallthrough
CT: control target
= control target key end

     0   :  { %10 = vsyncpa [#allocation3], 0  ;;  %s1405_s0 = inlined_call_operand.hbm [shape: f32[16,256], index: 0, kind: input, shape index: {}]   ;;  %s1406_s1 = inlined_call_operand.hbm [shape: f32[1,256], index: 1, kind: input, shape index: {}]   ;;  %s1407_s2 = inlined_call_operand.hbm [shape: f32[2,256], index: 2, kind: input, shape index: {}]   ;;  %s1408_s3 = inlined_call_operand.hbm [shape: f32[256,256], index: 3, kind: input, shape index: {}]   ;;  %s1409_s4 = inlined_call_operand.vmem [shape: f32[1,256], index: 4, kind: input, shape index: {}]   ;;  %s1410_s5 = inlined_call_operand.hbm [shape: f32[16,256], index: 5, kind: output, shape index: {}]  }
   0x1   :  { %12 = vsyncpa [#allocation3 + $0x1], 0 }
   0x2   :  { %13 = vsyncpa [#allocation6], 0 }
   0x3   :  { %14 = vsyncpa [#allocation9], 0 }
   0x4   :  { %15 = vsyncpa [#allocation4], 0 }
   0x5   :  { %17 = vsyncpa [#allocation4 + $0x1], 0  ;;  %s1173_s18 = smov 0   ;;  %s1175_s19 = smov 0  }
   0x6   :  { %s1177_s20 = smov 0   ;;  %s1179_s21 = smov 0  }
   0x7 LB: > { %s1194_s22 = sadd.s32 4294967295, %s1128_s21   ;;  %s827_s23 = sadd.s32 4294967294, %s1128_s21   ;;  %s1128_s21 = sphi %s1179_s21, %s1434_s21   ;;  %s1124_s20 = sphi %s1177_s20, %s1433_s20   ;;  %s1120_s19 = sphi %s1175_s19, %s1432_s19   ;;  %s1116_s18 = sphi %s1173_s18, %s1431_s18  }
   0x8   : > { %p43_p0 = scmp.ne.s32.totalorder %s1120_s19, %s1116_s18  ;;  %p1411_p1 = scmp.eq.s32.totalorder %s1194_s22, 0 }
   0x9   : > { %p157_p3 = scmp.eq.s32.totalorder %s827_s23, 1  ;;  %p828_p5 = scmp.ge.s32.totalorder %s1128_s21, 1 }
   0xa   : > { %p1203_p4 = por %p1411_p1, %p43_p0  ;;  %p164_p7 = scmp.lt.s32.totalorder %s1128_s21, 3 }
   0xb   : > { %p1208_p6 = por %p157_p3, %p43_p0  ;;  %s1130_s27 = smov [#allocation5]  }
   0xc   : > { %s1415_s24 = scalar_select %p1203_p4, 1, 0 }
   0xd   : > { %s1416_s25 = scalar_select %p1208_p6, 1, 0 }
   0xe   : > { %p1213_p8 = pnand %p828_p5, %p164_p7  ;;  %s177_s28 = sshll.u32 %s1130_s27, 4  ;;  %s178_s28 = int_to_ptr.vmem [resolvable:$true] %s177_s28 }
   0xf   : > { %s1131_s29 = smov [#allocation7]   ;;  %s1132_s7 = smov [#allocation8]  }
  0x10   : > { %s1417_s26 = scalar_select %p1213_p8, 1, 0 }
  0x11   : > { %p877_p10 = pneg %p1213_p8  ;;  %s188_s30 = sshll.u32 %s1131_s29, 4  ;;  %s189_s30 = int_to_ptr.vmem [resolvable:$true] %s188_s30 }
  0x12   : > { %s198_s8 = sshll.u32 %s1132_s7, 4  ;;  %s961_s9 = scalar_lea.vmem %s178_s28, 32  ;;  %s1226_s8 = int_to_ptr.vmem [resolvable:$true] %s198_s8 }
  0x13   : > { %p1222_p11 = pnand %p877_p10, %p1411_p1  ;;  %p962_p13 = scmp.ne.s32.totalorder %s178_s28, %s961_s9 }
  0x14   : > { %p969_p5 = scmp.lt.s32.totalorder %s178_s28, %s178_s28  ;;  %p970_p7 = scmp.lt.s32.totalorder %s961_s9, %s961_s9 }
  0x15   : > { %p952_p12 = pneg %p1222_p11 }
  0x16   : > { %p971_p10 = por %p970_p7, %p969_p5 }
  0x17   : > { %p964_p0 = pnand %p962_p13, %p952_p12 }
  0x19   : > { %p965_p3 = pneg %p964_p0 }
  0x1b   : > { %p972_p9 = pnand %p971_p10, %p965_p3 }
  0x1d   : > { %975 = shalt.err (!%p972_p9)
}
  0x1e   : > { %880 = dma.hbm_to_vmem [thread:$0]  (!%p1222_p11), %s1406_s1, 32, %s178_s28, [#allocation6]  }
  0x1f   : > { %s987_s12 = scalar_lea.vmem %s189_s30, 64  ;;  %p995_p13 = scmp.lt.s32.totalorder %s189_s30, %s189_s30 }
  0x20   : > { %p988_p1 = scmp.ne.s32.totalorder %s189_s30, %s987_s12  ;;  %p996_p0 = scmp.lt.s32.totalorder %s987_s12, %s987_s12 }
  0x22   : > { %p990_p2 = pnand %p988_p1, %p952_p12  ;;  %p997_p4 = por %p996_p0, %p995_p13 }
  0x24   : > { %p991_p6 = pneg %p990_p2 }
  0x26   : > { %p998_p8 = pnand %p997_p4, %p991_p6 }
  0x28   : > { %1001 = shalt.err (!%p998_p8)
}
  0x29   : > { %883 = dma.hbm_to_vmem [thread:$0]  (!%p1222_p11), %s1407_s2, 64, %s189_s30, [#allocation6]  }
  0x2a   : > { %s1013_s15 = scalar_lea.vmem %s1226_s8, 8192  ;;  %p1021_p3 = scmp.lt.s32.totalorder %s1226_s8, %s1226_s8 }
  0x2b   : > { %p1014_p9 = scmp.ne.s32.totalorder %s1226_s8, %s1013_s15  ;;  %p1022_p4 = scmp.lt.s32.totalorder %s1013_s15, %s1013_s15 }
  0x2d   : > { %p1016_p1 = pnand %p1014_p9, %p952_p12  ;;  %p1023_p6 = por %p1022_p4, %p1021_p3 }
  0x2f   : > { %p1017_p2 = pneg %p1016_p1 }
  0x31   : > { %p1024_p8 = pnand %p1023_p6, %p1017_p2 }
  0x33   : > { %1027 = shalt.err (!%p1024_p8)
}
  0x34   : > { %s1133_s16 = smov 256   ;;  %s1134_s17 = smov 16  }
  0x35   : > { %886 = dma.hbm_to_vmem [thread:$0]  (!%p1222_p11), %s1408_s3, 8192, %s1226_s8, [#allocation9], %s1133_s16, %s1133_s16, %s1134_s17  }
  0x36   : > { %s1260_s28 = sadd.s32 1, %s1128_s21   ;;  %s30_s30 = sadd.s32 1, %s1124_s20 }
  0x37   : > { %s27_s29 = ssub.s32 %s1128_s21, %s1260_s28  ;;  %p37_p5 = scmp.ne.s32.totalorder %s1124_s20, %s1120_s19 }
  0x38   : > { %p28_p12 = scmp.eq.s32.totalorder %s27_s29, 0  ;;  %p38_p7 = scmp.eq.s32.totalorder %s1128_s21, 0 }
  0x39   : > { %p898_p10 = scmp.lt.s32.totalorder %s1128_s21, 2  ;;  %p1419_p0 = scmp.eq.s32.totalorder %s1194_s22, 1 }
  0x3a   : > { %s1270_s7 = scalar_select %p28_p12, %s1124_s20, %s30_s30  }
  0x3b   : > { %p39_p13 = por %p38_p7, %p37_p5  ;;  %p1274_p9 = por %p1419_p0, %p37_p5 }
  0x3c   : > { %s215_s6 = sand.u32 1, %s1124_s20   ;;  %s855_s10 = sshll.u32 %s1128_s21, 8 }
  0x3d   : > { %s1420_s9 = scalar_select %p1274_p9, 1, 0 }
  0x3e   : > { %s833_s8 = sshll.u32 %s215_s6, 4  ;;  %s1283_s13 = scalar_lea.hbm %s1405_s0, %s855_s10 }
  0x3f   : > { %s219_s14 = scalar_lea.vmem [#allocation2], %s833_s8  ;;  %p1285_p11 = pnand %p898_p10, %p39_p13 }
  0x40   : > { %s227_s15 = sshll.u32 %s219_s14, 4  ;;  %s216_s17 = scalar_lea.sflag [#allocation3], %s215_s6  ;;  %s228_s15 = int_to_ptr.vmem [resolvable:$true] %s227_s15 }
  0x41   : > { %s1028_s23 = scalar_lea.hbm %s1283_s13, 256  ;;  %p1030_p2 = pneg %p1285_p11 }
  0x42   : > { %p1029_p1 = scmp.ne.s32.totalorder %s1283_s13, %s1028_s23  ;;  %s1033_s30 = scalar_lea.hbm %s1405_s0, 512 }
  0x43   : > { %p1034_p6 = scmp.lt.s32.totalorder %s1283_s13, %s1405_s0  ;;  %p1035_p8 = scmp.lt.s32.totalorder %s1033_s30, %s1028_s23 }
  0x44   : > { %p1031_p3 = pnand %p1030_p2, %p1029_p1 }
  0x45   : > { %p1036_p12 = por %p1035_p8, %p1034_p6 }
  0x46   : > { %p1032_p4 = pneg %p1031_p3 }
  0x48   : > { %p1037_p5 = pnand %p1036_p12, %p1032_p4 }
  0x4a   : > { %1040 = shalt.err (!%p1037_p5)
}
  0x4b   : > { %s1041_s11 = scalar_lea.vmem %s228_s15, 256  ;;  %s1135_s6 = smov [#allocation2]  }
  0x4c   : > { %p1042_p7 = scmp.ne.s32.totalorder %s228_s15, %s1041_s11  ;;  %s1046_s12 = sshll.u32 %s1135_s6, 4  ;;  %s1047_s12 = int_to_ptr.vmem [resolvable:$false] %s1046_s12 }
  0x4d   : > { %s1048_s14 = scalar_lea.vmem %s1047_s12, 512  ;;  %p1049_p0 = scmp.lt.s32.totalorder %s228_s15, %s1047_s12 }
  0x4e   : > { %p1044_p10 = pnand %p1042_p7, %p1030_p2  ;;  %p1050_p1 = scmp.lt.s32.totalorder %s1048_s14, %s1041_s11 }
  0x50   : > { %p1045_p13 = pneg %p1044_p10  ;;  %p1051_p3 = por %p1050_p1, %p1049_p0 }
  0x52   : > { %p1052_p9 = pnand %p1051_p3, %p1045_p13 }
  0x54   : > { %1055 = shalt.err (!%p1052_p9)
}
  0x55   : > { %890 = dma.hbm_to_vmem [thread:$0]  (!%p1285_p11), %s1283_s13, 256, %s228_s15, %s216_s17  }
  0x56   : > { %p1422_p4 = scmp.ne.s32.totalorder %s1417_s26, 0 }
  0x57   : > { %s1306_s23 = sand.u32 (!%p1422_p4), 1, %s1120_s19   ;;  %p1423_p2 = scmp.ne.s32.totalorder (!%p1422_p4), %s1415_s24, 0 }
  0x58   : > { %236 = sbr.rel (%p1422_p4) target bundleno = 553 (0x229), region = 40  ;;  %s837_s27 = sshll.u32 (!%p1422_p4), %s1306_s23, 4 }
  0x59   : > { %s239_s29 = scalar_lea.sflag (!%p1422_p4), [#allocation3], %s1306_s23  ;;  %s242_s30 = scalar_lea.vmem (!%p1422_p4), [#allocation2], %s837_s27 }
  0x5d   : > { %1099 = dma.done.wait (%p1423_p2), %s239_s29, 256  }
  0x5e   : > { %1101 = vsyncadd (%p1423_p2), %s239_s29, 4294967040  ;;  %p1424_p9 = scmp.eq.s32.totalorder %s1194_s22, 0 }
  0x60   : > { %1103 = dma.done.wait (%p1424_p9), [#allocation6], 96   ;;  %p1425_p11 = pmov %p1424_p9 }
  0x61   : > { %p1426_p6 = pmov %p1424_p9 }
  0x62   : > { %1105 = vsyncadd (%p1425_p11), [#allocation6], 4294967200 }
  0x63   : > { %1107 = dma.done.wait (%p1426_p6), [#allocation9], 8192   ;;  %p1427_p8 = pmov %p1426_p6 }
  0x64   : > { %v285_v0 = vlaneseq  ;;  %v281_v4 = vld [vmem:[%s242_s30] sm:$0xff]  ;;  %v282_v5 = vld [vmem:[%s242_s30 + $0x8] sm:$0xff]  ;;  %s856_s13 = sshll.u32 %s1194_s22, 8  ;;  %s280_s15 = scalar_lea.vmem [#allocation10], %s837_s27 }
  0x65   : > { %1109 = vsyncadd (%p1427_p8), [#allocation9], 4294959104  ;;  %v283_v6 = vld [vmem:[#allocation5] sm:$0x3]  ;;  %v594_v13 = vld [vmem:[#allocation8 + $0xf0] sm:$0xff]  ;;  %s728_s16 = sshll.u32 %s280_s15, 4  ;;  %s726_s8 = scalar_lea.hbm %s1410_s5, %s856_s13  ;;  %s729_s16 = int_to_ptr.vmem [resolvable:$true] %s728_s16 }
  0x66   : > { %v1324_v1 = vshrl.u32 %v285_v0, 7  ;;  %v595_v12 = vld [vmem:[#allocation8 + $0xf8] sm:$0xff]  ;;  %v593_v14 = vld [vmem:[#allocation8 + $0xe8] sm:$0xff]  ;;  %v592_v15 = vld [vmem:[#allocation8 + $0xe0] sm:$0xff]  ;;  %s714_s11 = scalar_lea.sflag [#allocation4], %s1306_s23  ;;  %s1056_s6 = scalar_lea.vmem %s729_s16, 256 }
  0x67   : > { %640 = vmatprep.subr.mxu0 %v595_v12  ;;  %v591_v16 = vld [vmem:[#allocation8 + $0xd8] sm:$0xff]  ;;  %v590_v17 = vld [vmem:[#allocation8 + $0xd0] sm:$0xff]  ;;  %v589_v18 = vld [vmem:[#allocation8 + $0xc8] sm:$0xff]  ;;  %p1057_p12 = scmp.ne.s32.totalorder %s729_s16, %s1056_s6  ;;  %p1428_p5 = scmp.ne.s32.totalorder %s1420_s9, 0 }
  0x68   : > { %v1327_v2 = vsub.s32 0, %v1324_v1  ;;  %v1330_v3 = vsub.s32 1, %v1324_v1  ;;  %641 = vmatpush1.msra.mxu0 %v594_v13  ;;  %v588_v19 = vld [vmem:[#allocation8 + $0xc0] sm:$0xff]  ;;  %v587_v20 = vld [vmem:[#allocation8 + $0xb8] sm:$0xff]  ;;  %v586_v21 = vld [vmem:[#allocation8 + $0xb0] sm:$0xff]  ;;  %s1142_s22 = smov [#allocation10]  }
  0x69   : > { %642 = vmatprep.subr.mxu0 %v593_v14  ;;  %v585_v22 = vld [vmem:[#allocation8 + $0xa8] sm:$0xff]  ;;  %v584_v23 = vld [vmem:[#allocation8 + $0xa0] sm:$0xff]  ;;  %v583_v24 = vld [vmem:[#allocation8 + $0x98] sm:$0xff]  ;;  %p1058_p7 = pnand %p1057_p12, %p1428_p5  ;;  %s1060_s12 = sshll.u32 %s1142_s22, 4  ;;  %s1061_s12 = int_to_ptr.vmem [resolvable:$false] %s1060_s12 }
  0x6a   : > { %v288_v7 = vrot.slane %v283_v6, %v1327_v2  ;;  %v292_v8 = vrot.slane %v283_v6, %v1330_v3  ;;  %643 = vmatpush1.msra.mxu0 %v592_v15  ;;  %v582_v25 = vld [vmem:[#allocation8 + $0x90] sm:$0xff]  ;;  %v581_v26 = vld [vmem:[#allocation8 + $0x88] sm:$0xff]  ;;  %v580_v27 = vld [vmem:[#allocation8 + $0x80] sm:$0xff]  ;;  %s1062_s14 = scalar_lea.vmem %s1061_s12, 512  ;;  %p1063_p13 = scmp.lt.s32.totalorder %s729_s16, %s1061_s12 }
  0x6b   : > { %644 = vmatprep.subr.mxu0 %v591_v16  ;;  %v579_v28 = vld [vmem:[#allocation8 + $0x78] sm:$0xff]  ;;  %v578_v29 = vld [vmem:[#allocation8 + $0x70] sm:$0xff]  ;;  %v577_v30 = vld [vmem:[#allocation8 + $0x68] sm:$0xff]  ;;  %p1059_p10 = pneg %p1058_p7  ;;  %p1064_p0 = scmp.lt.s32.totalorder %s1062_s14, %s1056_s6 }
  0x6c   : > { %v295_v9 = vmul.f32 %v288_v7, %v281_v4  ;;  %v296_v10 = vmul.f32 %v292_v8, %v282_v5  ;;  %645 = vmatpush1.msra.mxu0 %v590_v17  ;;  %v576_v31 = vld [vmem:[#allocation8 + $0x60] sm:$0xff]  ;;  %v575_v32 = vld [vmem:[#allocation8 + $0x58] sm:$0xff]  ;;  %v574_v33 = vld [vmem:[#allocation8 + $0x50] sm:$0xff] }
  0x6d   : > { %646 = vmatprep.subr.mxu0 %v589_v18  ;;  %v573_v34 = vld [vmem:[#allocation8 + $0x48] sm:$0xff]  ;;  %v572_v35 = vld [vmem:[#allocation8 + $0x40] sm:$0xff]  ;;  %v571_v36 = vld [vmem:[#allocation8 + $0x38] sm:$0xff]  ;;  %p1065_p1 = por %p1064_p0, %p1063_p13 }
  0x6e   : > { %v297_v11 = vadd.f32 %v296_v10, %v295_v9  ;;  %647 = vmatpush1.msra.mxu0 %v588_v19  ;;  %v570_v37 = vld [vmem:[#allocation8 + $0x30] sm:$0xff]  ;;  %v569_v38 = vld [vmem:[#allocation8 + $0x28] sm:$0xff]  ;;  %v568_v39 = vld [vmem:[#allocation8 + $0x20] sm:$0xff] }
  0x6f   : > { %648 = vmatprep.subr.mxu0 %v587_v20  ;;  %v567_v40 = vld [vmem:[#allocation8 + $0x18] sm:$0xff]  ;;  %v566_v41 = vld [vmem:[#allocation8 + $0x10] sm:$0xff]  ;;  %v565_v42 = vld [vmem:[#allocation8 + $0x8] sm:$0xff]  ;;  %p1066_p3 = pnand %p1065_p1, %p1059_p10 }
  0x70   : > { %298 = vadd.xlane.f32.xlu0 %v297_v11  ;;  %649 = vmatpush1.msra.mxu0 %v586_v21  ;;  %v564_v43 = vld [vmem:[#allocation8] sm:$0xff]  ;;  %v627_v44 = vld [vmem:[#allocation8 + $0x1f8] sm:$0xff]  ;;  %v626_v45 = vld [vmem:[#allocation8 + $0x1f0] sm:$0xff] }
  0x71   : > { %650 = vmatprep.subr.mxu0 %v585_v22  ;;  %v625_v46 = vld [vmem:[#allocation8 + $0x1e8] sm:$0xff]  ;;  %v624_v47 = vld [vmem:[#allocation8 + $0x1e0] sm:$0xff]  ;;  %v623_v48 = vld [vmem:[#allocation8 + $0x1d8] sm:$0xff] }
  0x72   : > { %651 = vmatpush1.msra.mxu0 %v584_v23  ;;  %v622_v49 = vld [vmem:[#allocation8 + $0x1d0] sm:$0xff]  ;;  %v621_v50 = vld [vmem:[#allocation8 + $0x1c8] sm:$0xff]  ;;  %v620_v51 = vld [vmem:[#allocation8 + $0x1c0] sm:$0xff] }
  0x73   : > { %652 = vmatprep.subr.mxu0 %v583_v24  ;;  %v619_v52 = vld [vmem:[#allocation8 + $0x1b8] sm:$0xff]  ;;  %v618_v53 = vld [vmem:[#allocation8 + $0x1b0] sm:$0xff]  ;;  %v617_v54 = vld [vmem:[#allocation8 + $0x1a8] sm:$0xff] }
  0x74   : > { %653 = vmatpush1.msra.mxu0 %v582_v25  ;;  %v616_v55 = vld [vmem:[#allocation8 + $0x1a0] sm:$0xff]  ;;  %v615_v56 = vld [vmem:[#allocation8 + $0x198] sm:$0xff]  ;;  %v614_v57 = vld [vmem:[#allocation8 + $0x190] sm:$0xff] }
  0x75   : > { %654 = vmatprep.subr.mxu0 %v581_v26  ;;  %v613_v58 = vld [vmem:[#allocation8 + $0x188] sm:$0xff]  ;;  %v612_v59 = vld [vmem:[#allocation8 + $0x180] sm:$0xff]  ;;  %v611_v60 = vld [vmem:[#allocation8 + $0x178] sm:$0xff] }
  0x76   : > { %655 = vmatpush1.msra.mxu0 %v580_v27  ;;  %v610_v61 = vld [vmem:[#allocation8 + $0x170] sm:$0xff]  ;;  %v609_v62 = vld [vmem:[#allocation8 + $0x168] sm:$0xff]  ;;  %v608_v63 = vld [vmem:[#allocation8 + $0x160] sm:$0xff]  ;;  %v1136_v27 = vmov 683565275  }
  0x77   : > { %656 = vmatprep.subr.mxu0 %v579_v28  ;;  %v607_v0 = vld [vmem:[#allocation8 + $0x158] sm:$0xff]  ;;  %v606_v4 = vld [vmem:[#allocation8 + $0x150] sm:$0xff]  ;;  %v605_v5 = vld [vmem:[#allocation8 + $0x148] sm:$0xff] }
  0x78   : > { %657 = vmatpush1.msra.mxu0 %v578_v29  ;;  %v604_v6 = vld [vmem:[#allocation8 + $0x140] sm:$0xff]  ;;  %v603_v7 = vld [vmem:[#allocation8 + $0x138] sm:$0xff]  ;;  %v602_v8 = vld [vmem:[#allocation8 + $0x130] sm:$0xff]  ;;  %v1137_v29 = vmov 2475754826  }
  0x79   : > { %658 = vmatprep.subr.mxu0 %v577_v30  ;;  %v601_v9 = vld [vmem:[#allocation8 + $0x128] sm:$0xff]  ;;  %v600_v10 = vld [vmem:[#allocation8 + $0x120] sm:$0xff]  ;;  %v599_v11 = vld [vmem:[#allocation8 + $0x118] sm:$0xff] }
  0x7a   : > { %659 = vmatpush1.msra.mxu0 %v576_v31  ;;  %v598_v12 = vld [vmem:[#allocation8 + $0x110] sm:$0xff]  ;;  %v597_v13 = vld [vmem:[#allocation8 + $0x108] sm:$0xff]  ;;  %v596_v14 = vld [vmem:[#allocation8 + $0x100] sm:$0xff] }
  0x7b   : > { %660 = vmatprep.subr.mxu0 %v575_v32  ;;  %v1138_v32 = vmov 2131351028  }
  0x7c   : > { %661 = vmatpush1.msra.mxu0 %v574_v33 }
  0x7d   : > { %662 = vmatprep.subr.mxu0 %v573_v34 }
  0x7e   : > { %663 = vmatpush1.msra.mxu0 %v572_v35  ;;  %v1139_v35 = vmov 2102212464  }
  0x7f   : > { %664 = vmatprep.subr.mxu0 %v571_v36 }
  0x80   : > { %665 = vmatpush1.msra.mxu0 %v570_v37 }
  0x81   : > { %666 = vmatprep.subr.mxu0 %v569_v38  ;;  %v1140_v38 = vmov 920167782  }
  0x82   : > { %667 = vmatpush1.msra.mxu0 %v568_v39 }
  0x83   : > { %668 = vmatprep.subr.mxu0 %v567_v40 }
  0x84   : > { %669 = vmatpush1.msra.mxu0 %v566_v41  ;;  %v1141_v41 = vmov 1326507024  }
  0x85   : > { %670 = vmatprep.subr.mxu0 %v565_v42 }
  0x86   : > { %671 = vmatpush1.msra.mxu0 %v564_v43 }
  0x87   : > { %672 = vmatprep.subr.mxu0 %v627_v44 }
  0x88   : > { %673 = vmatpush2.msra.mxu0 %v626_v45 }
  0x89   : > { %674 = vmatprep.subr.mxu0 %v625_v46 }
  0x8a   : > { %675 = vmatpush2.msra.mxu0 %v624_v47 }
  0x8b   : > { %676 = vmatprep.subr.mxu0 %v623_v48 }
  0x8c   : > { %677 = vmatpush2.msra.mxu0 %v622_v49 }
  0x8d   : > { %678 = vmatprep.subr.mxu0 %v621_v50 }
  0x8e   : > { %679 = vmatpush2.msra.mxu0 %v620_v51 }
  0x8f   : > { %680 = vmatprep.subr.mxu0 %v619_v52 }
  0x90   : > { %681 = vmatpush2.msra.mxu0 %v618_v53 }
  0x91   : > { %682 = vmatprep.subr.mxu0 %v617_v54 }
  0x92   : > { %683 = vmatpush2.msra.mxu0 %v616_v55 }
  0x93   : > { %684 = vmatprep.subr.mxu0 %v615_v56 }
  0x94   : > { %685 = vmatpush2.msra.mxu0 %v614_v57 }
  0x95   : > { %686 = vmatprep.subr.mxu0 %v613_v58 }
  0x96   : > { %687 = vmatpush2.msra.mxu0 %v612_v59 }
  0x97   : > { %688 = vmatprep.subr.mxu0 %v611_v60 }
  0x98   : > { %689 = vmatpush2.msra.mxu0 %v610_v61 }
  0x99   : > { %690 = vmatprep.subr.mxu0 %v609_v62 }
  0x9a   : > { %691 = vmatpush2.msra.mxu0 %v608_v63 }
  0x9b   : > { %692 = vmatprep.subr.mxu0 %v607_v0 }
  0x9c   : > { %693 = vmatpush2.msra.mxu0 %v606_v4 }
  0x9d   : > { %694 = vmatprep.subr.mxu0 %v605_v5 }
  0x9e   : > { %695 = vmatpush2.msra.mxu0 %v604_v6 }
  0x9f   : > { %696 = vmatprep.subr.mxu0 %v603_v7 }
  0xa0   : > { %697 = vmatpush2.msra.mxu0 %v602_v8 }
  0xa1   : > { %698 = vmatprep.subr.mxu0 %v601_v9 }
  0xa2   : > { %699 = vmatpush2.msra.mxu0 %v600_v10 }
  0xa3   : > { %700 = vmatprep.subr.mxu0 %v599_v11 }
  0xa4   : > { %701 = vmatpush2.msra.mxu0 %v598_v12 }
  0xa5   : > { %702 = vmatprep.subr.mxu0 %v597_v13 }
  0xa6   : > { %703 = vmatpush2.msra.mxu0 %v596_v14 }
  0xf9   : > { %v299_v15 = vpop.xlane.xlu0 %298 }
  0xfa   : > { %v1334_v16 = vmul.f32 -0.5, %v299_v15 }
  0xfc   : > { %v304_v17 = vand.u32 2139095040, %v1334_v16  ;;  %v301_v21 = vand.u32 2147483647, %v1334_v16  ;;  %vm303_vm7 = vcmp.lt.s32.totalorder %v1334_v16, 0  ;;  %vm393_vm15 = vweird.f32 %v1334_v16 }
  0xfe   : > { %v305_v18 = vshrl.u32 %v304_v17, 23  ;;  %v308_v24 = vand.u32 8388607, %v301_v21  ;;  %vm302_vm8 = vcmp.le.f32.partialorder %v301_v21, 0.7853982 }
 0x100   : > { %v842_v19 = vadd.s32 4294967169, %v305_v18  ;;  %v309_v43 = vor.u32 8388608, %v308_v24 }
 0x102   : > { %v311_v20 = vadd.s32 1, %v842_v19  ;;  %v349_v57 = vshll.u32 %v309_v43, 8 }
 0x104   : > { %vm312_vm0 = vcmp.gt.s32.totalorder %v311_v20, 0 }
 0x105   : > { %v313_v22 = vsel %vm312_vm0, %v311_v20, 0 }
 0x106   : > { %v315_v23 = vand.u32 31, %v313_v22  ;;  %v314_v26 = vshrl.u32 %v313_v22, 5 }
 0x108   : > { %v316_v25 = vsub.s32 32, %v315_v23  ;;  %v318_v28 = vshll.u32 %v1136_v27, %v315_v23  ;;  %v321_v30 = vshll.u32 %v1137_v29, %v315_v23  ;;  %v324_v34 = vshll.u32 %v1138_v32, %v315_v23 }
 0x109   : > { %v327_v37 = vshll.u32 %v1139_v35, %v315_v23  ;;  %v330_v40 = vshll.u32 %v1140_v38, %v315_v23  ;;  %vm333_vm1 = vcmp.lt.s32.totalorder %v314_v26, 1  ;;  %vm336_vm2 = vcmp.lt.s32.totalorder %v314_v26, 4 }
 0x10a   : > { %v319_v31 = vshrl.u32 %v1137_v29, %v316_v25  ;;  %v322_v33 = vshrl.u32 %v1138_v32, %v316_v25  ;;  %v325_v36 = vshrl.u32 %v1139_v35, %v316_v25  ;;  %v328_v39 = vshrl.u32 %v1140_v38, %v316_v25 }
 0x10b   : > { %v331_v42 = vshrl.u32 %v1141_v41, %v316_v25  ;;  %v317_v52 = vshrl.u32 %v1136_v27, %v316_v25  ;;  %vm335_vm3 = vcmp.lt.s32.totalorder %v314_v26, 3  ;;  %vm334_vm4 = vcmp.lt.s32.totalorder %v314_v26, 2 }
 0x10c   : > { %v320_v44 = vor.u32 %v319_v31, %v318_v28  ;;  %v323_v45 = vor.u32 %v322_v33, %v321_v30  ;;  %v326_v46 = vor.u32 %v325_v36, %v324_v34  ;;  %v329_v47 = vor.u32 %v328_v39, %v327_v37 }
 0x10d   : > { %v332_v48 = vor.u32 %v331_v42, %v330_v40  ;;  %v516_v39 = vsub.s32 2, %v1324_v1  ;;  %v536_v40 = vsub.s32 3, %v1324_v1  ;;  %v508_v42 = vld [vmem:[#allocation7] sm:$0xf] }
 0x10e   : > { %v338_v49 = vsel %vm336_vm2, %v326_v46, 2102212464  ;;  %v341_v50 = vsel %vm333_vm1, %v320_v44, %v323_v45  ;;  %v345_v51 = vsel %vm333_vm1, %v323_v45, %v326_v46  ;;  %v342_v53 = vsel %vm336_vm2, %v329_v47, 920167782 }
 0x10f   : > { %v346_v54 = vsel %vm336_vm2, %v332_v48, 1326507024  ;;  %v343_v55 = vsel %vm335_vm3, %v326_v46, %v342_v53  ;;  %v337_v58 = vsel %vm333_vm1, %v317_v52, %v320_v44  ;;  %v339_v59 = vsel %vm335_vm3, %v323_v45, %v338_v49 }
 0x110   : > { %v347_v56 = vsel %vm335_vm3, %v329_v47, %v346_v54  ;;  %v344_v60 = vsel %vm334_vm4, %v341_v50, %v343_v55  ;;  %v340_v5 = vsel %vm334_vm4, %v337_v58, %v339_v59  ;;  %v517_v43 = vrot.slane %v508_v42, %v516_v39 }
 0x111   : > { %v348_v61 = vsel %vm334_vm4, %v345_v51, %v347_v56  ;;  %v1343_v0 = vmul.u32.u64.low %v349_v57, %v344_v60  ;;  %v1344_v4 = vmul.u32.u64.high %v349_v57, %v344_v60, %v1343_v0  ;;  %v356_v7 = vmul.u32 %v349_v57, %v340_v5 }
 0x112   : > { %v1340_v62 = vmul.u32.u64.low %v349_v57, %v348_v61  ;;  %v1341_v63 = vmul.u32.u64.high %v349_v57, %v348_v61, %v1340_v62  ;;  %v537_v44 = vrot.slane %v508_v42, %v536_v40  ;;  %v513_v45 = vrot.slane %v508_v42, %v1327_v2 }
 0x113   : > { %v359_v6 = vadd.s32 1, %v1344_v4  ;;  %v533_v21 = vrot.slane %v508_v42, %v1330_v3  ;;  %v527_v51 = vrot.slane %v517_v43, %v1327_v2 }
 0x114   : > { %vm358_vm5 = vc.u32 %v1341_v63, %v1343_v0  ;;  %v357_v20 = vadd.s32 %v1343_v0, %v1341_v63  ;;  %v547_v52 = vrot.slane %v537_v44, %v1330_v3  ;;  %v523_v53 = vrot.slane %v513_v45, %v1327_v2 }
 0x115   : > { %v360_v8 = vsel %vm358_vm5, %v359_v6, %v1344_v4  ;;  %v543_v54 = vrot.slane %v533_v21, %v1330_v3 }
 0x116   : > { %v361_v9 = vadd.s32 %v360_v8, %v356_v7 }
 0x118   : > { %v362_v10 = vadd.s32 536870912, %v361_v9 }
 0x11a   : > { %v363_v11 = vshrl.u32 %v362_v10, 30 }
 0x11c   : > { %v364_v12 = vshll.u32 %v363_v11, 30  ;;  %v387_v34 = vsub.s32 4, %v363_v11 }
 0x11e   : > { %v365_v13 = vsub.s32 %v361_v9, %v364_v12  ;;  %v388_v37 = vsel %vm303_vm7, %v387_v34, %v363_v11 }
 0x11f   : > { %v390_v38 = vsel %vm302_vm8, 0, %v388_v37 }
 0x120   : > { %v367_v14 = vsub.s32 0, %v365_v13  ;;  %v497_v41 = vadd.s32 3, %v390_v38  ;;  %v394_v46 = vand.u32 3, %v390_v38 }
 0x122   : > { %v843_v15 = vmin.u32 %v367_v14, %v365_v13  ;;  %v498_v47 = vand.u32 3, %v497_v41  ;;  %vm399_vm9 = vcmp.eq.s32.totalorder %v394_v46, 2  ;;  %vm396_vm11 = vcmp.eq.s32.totalorder %v394_v46, 0 }
 0x123   : > { %vm395_vm13 = vcmp.lt.s32.totalorder %v394_v46, 2 }
 0x124   : > { %v369_v17 = vclz %v843_v15  ;;  %vm503_vm10 = vcmp.eq.s32.totalorder %v498_v47, 2  ;;  %vm500_vm12 = vcmp.eq.s32.totalorder %v498_v47, 0  ;;  %vm499_vm14 = vcmp.lt.s32.totalorder %v498_v47, 2 }
 0x126   : > { %v844_v18 = vadd.s32 4294967294, %v369_v17 }
 0x128   : > { %vm845_vm6 = vcmp.lt.s32.totalorder %v844_v18, 0 }
 0x129   : > { %v372_v19 = vsel %vm845_vm6, 0, %v844_v18 }
 0x12a   : > { %v373_v22 = vsub.s32 32, %v372_v19  ;;  %v377_v23 = vsub.s32 4294967266, %v372_v19  ;;  %v374_v24 = vshll.u32 %v365_v13, %v372_v19 }
 0x12c   : > { %v375_v25 = vshrl.u32 %v357_v20, %v373_v22  ;;  %v378_v26 = vadd.s32 127, %v377_v23  ;;  %v628_v20 = vld [vmem:[%s1409_s4] sm:$0x3] }
 0x12d   : > { %v633_v22 = vrot.slane %v628_v20, %v1327_v2  ;;  %v637_v23 = vrot.slane %v628_v20, %v1330_v3 }
 0x12e   : > { %v376_v27 = vor.u32 %v375_v25, %v374_v24  ;;  %v379_v28 = vshll.u32 %v378_v26, 23 }
 0x130   : > { %v380_v29 = vor.u32 4788187, %v379_v28  ;;  %v383_v31 = vcvt.s32.f32 %v376_v27 }
 0x132   : > { %v381_v30 = vand.u32 2147483647, %v380_v29 }
 0x134   : > { %v384_v32 = vmul.f32 %v383_v31, %v381_v30 }
 0x136   : > { %v385_v33 = vxor.u32 2147483648, %v384_v32 }
 0x138   : > { %v386_v35 = vsel %vm303_vm7, %v385_v33, %v384_v32 }
 0x139   : > { %v389_v36 = vsel %vm302_vm8, %v1334_v16, %v386_v35 }
 0x13a   : > { %946 = vcosq.f32 %v389_v36 }
 0x13b   : > { %948 = vsinq.f32 %v389_v36 }
 0x147   : > { %v947_v48 = vpop.eup %946 }
 0x148   : > { %v949_v49 = vpop.eup %948  ;;  %v400_v50 = vxor.u32 2147483648, %v947_v48 }
 0x149   : > { %v397_v1 = vxor.u32 2147483648, %v949_v49 }
 0x14a   : > { %v401_v55 = vsel %vm399_vm9, %v400_v50, %v949_v49  ;;  %v505_v56 = vsel %vm503_vm10, %v400_v50, %v949_v49 }
 0x14b   : > { %v398_v57 = vsel %vm396_vm11, %v947_v48, %v397_v1  ;;  %v502_v58 = vsel %vm500_vm12, %v947_v48, %v397_v1 }
 0x14c   : > { %v402_v59 = vsel %vm395_vm13, %v398_v57, %v401_v55  ;;  %v506_v60 = vsel %vm499_vm14, %v502_v58, %v505_v56 }
 0x14d   : > { %v403_v61 = vsel %vm393_vm15, nan, %v402_v59  ;;  %v507_v62 = vsel %vm393_vm15, nan, %v506_v60 }
 0x14e   : > { %v529_v63 = vmul.f32 %v527_v51, %v403_v61  ;;  %v549_v0 = vmul.f32 %v547_v52, %v507_v62  ;;  %v553_v4 = vmul.f32 %v547_v52, %v403_v61  ;;  %v555_v5 = vmul.f32 %v527_v51, %v507_v62 }
 0x14f   : > { %v528_v6 = vmul.f32 %v523_v53, %v403_v61  ;;  %v548_v7 = vmul.f32 %v543_v54, %v507_v62  ;;  %v552_v8 = vmul.f32 %v543_v54, %v403_v61  ;;  %v554_v9 = vmul.f32 %v523_v53, %v507_v62 }
 0x150   : > { %v551_v10 = vsub.f32 %v529_v63, %v549_v0  ;;  %v557_v11 = vadd.f32 %v555_v5, %v553_v4 }
 0x151   : > { %v550_v12 = vsub.f32 %v528_v6, %v548_v7  ;;  %v556_v13 = vadd.f32 %v554_v9, %v552_v8 }
 0x152   : > { %v559_v14 = vmul.f32 %v551_v10, %v551_v10  ;;  %v561_v16 = vmul.f32 %v557_v11, %v557_v11 }
 0x153   : > { %v558_v15 = vmul.f32 %v550_v12, %v550_v12  ;;  %v560_v17 = vmul.f32 %v556_v13, %v556_v13 }
 0x154   : > { %v563_v18 = vadd.f32 %v561_v16, %v559_v14 }
 0x155   : > { %v562_v19 = vadd.f32 %v560_v17, %v558_v15 }
 0x156   : > { %704 = vmatprep.mubr.f32.mxu0 %v563_v18 }
 0x157   : > { %705 = vmatmul.mubr.f32.vlgmr.msra.gmra.mxu0 %v562_v19 }
 0x217   : > { %v706_v24 = vpop.f32.mrf.mxu0 }
 0x218   : > { %v707_v25 = vadd.f32 %v706_v24, %v633_v22 }
 0x219   : > { %v708_v26 = vpop.f32.mrf.mxu0 }
 0x21a   : > { %711 = vst [vmem:[%s280_s15] sm:$0xff] %v707_v25  ;;  %v709_v27 = vadd.f32 %v708_v26, %v637_v23 }
 0x21c   : > { %712 = vst [vmem:[%s280_s15 + $0x8] sm:$0xff] %v709_v27 }
 0x21d   : > { %1069 = shalt.err (!%p1066_p3)
}
 0x21e   : > { %s1070_s27 = scalar_lea.hbm %s726_s8, 256  ;;  %s1074_s30 = scalar_lea.hbm %s1410_s5, 512 }
 0x21f   : > { %p1071_p4 = scmp.ne.s32.totalorder %s726_s8, %s1070_s27  ;;  %p1075_p11 = scmp.lt.s32.totalorder %s726_s8, %s1410_s5 }
 0x220   : > { %p1076_p6 = scmp.lt.s32.totalorder %s1074_s30, %s1070_s27 }
 0x221   : > { %p1072_p2 = pnand %p1071_p4, %p1428_p5 }
 0x222   : > { %p1077_p8 = por %p1076_p6, %p1075_p11 }
 0x223   : > { %p1073_p9 = pneg %p1072_p2 }
 0x225   : > { %p1078_p12 = pnand %p1077_p8, %p1073_p9 }
 0x227   : > { %1081 = shalt.err (!%p1078_p12)
}
 0x228   : > { %875 = dma.vmem_to_hbm [thread:$0]  (%p1428_p5), %s729_s16, 256, %s726_s8, %s714_s11  }
 0x229 PF: > { %s740_s13 = sand.u32 1, %s1116_s18   ;;  %p1429_p7 = scmp.ne.s32.totalorder %s1416_s25, 0 }
 0x22a   : > { %p1430_p10 = scmp.ge.s32.totalorder %s1128_s21, 2  ;;  %s741_s15 = scalar_lea.sflag [#allocation4], %s740_s13 }
 0x22c   : > { %p892_p13 = pnand %p1430_p10, %p1429_p7 }
 0x22e   : > { %p893_p0 = pneg %p892_p13 }
 0x230   : > { %1111 = dma.done.wait (%p893_p0), %s741_s15, 256  }
 0x231   : > { %1113 = vsyncadd (%p893_p0), %s741_s15, 4294967040  ;;  %p20_p1 = scmp.ge.s32.totalorder %s1260_s28, 4   ;;  %s1431_s18 = smov %s1120_s19 }
 0x232   : > { %s1432_s19 = smov %s1124_s20  ;;  %s1433_s20 = smov %s1270_s7 }
 0x233   : > { %s1434_s21 = smov %s1260_s28  ;;  %22 = sbr.rel (!%p20_p1) target bundleno = 7 (0x7), region = 97 }
 0x238   :  { %746 = vsyncpa [#allocation3], 1 }
 0x239   :  { %748 = vsyncpa [#allocation3 + $0x1], 1 }
 0x23a   :  { %749 = vsyncpa [#allocation6], 1 }
 0x23b   :  { %750 = vsyncpa [#allocation9], 1 }
 0x23c   :  { %751 = vsyncpa [#allocation4], 1 }
 0x23d   :  { %753 = vsyncpa [#allocation4 + $0x1], 1 }

</bundles_post_ra>
